<compile_context>
chip_gen: v7x
topology: tpu7x:2x2x1
jax: 0.10.0
libtpu: 0.0.40
codegen_flags: <defaults>
</compile_context>

<pallas_src>
import jax
import jax.numpy as jnp
from jax.experimental import pallas as pl
from jax.experimental.pallas import tpu as pltpu

EPS = 1e-5  # PyTorch InstanceNorm2d default


def _patch_embed_kernel(x_ref, w_ref, gamma_ref, beta_ref, o_ref):
    # x_ref:     (Bt, P, K)  bf16 im2col patches for Bt batch elements
    # w_ref:     (K, Et)     bf16 flattened conv weight tile
    # gamma_ref: (1, Et)     f32 instance-norm affine scale
    # beta_ref:  (1, Et)     f32 instance-norm affine shift
    # o_ref:     (Bt, P, Et)
    w = w_ref[...]
    gamma = gamma_ref[...]
    beta = beta_ref[...]
    bt = x_ref.shape[0]
    for i in range(bt):  # static unroll over the batch tile
        # Conv as matmul on the MXU: bf16 operands, f32 accumulation.
        y = jnp.dot(x_ref[i], w, preferred_element_type=jnp.float32)  # (P, Et) f32
        # InstanceNorm2d: per (batch, channel) mean/var over spatial positions.
        mean = jnp.mean(y, axis=0, keepdims=True)                     # (1, Et)
        var = jnp.mean(jnp.square(y - mean), axis=0, keepdims=True)   # (1, Et)
        # Fold the affine into the normalization constants: y_hat = y*a + c.
        a = gamma * jax.lax.rsqrt(var + EPS)                          # (1, Et)
        c = beta - mean * a                                           # (1, Et)
        o_ref[i] = jnp.maximum(y * a + c, 0.0).astype(o_ref.dtype)


def _im2col(x, patch_size):
    """NCHW -> (B, Ho*Wo, C*9) for a 3x3 conv, stride=patch_size, padding=1."""
    B, C, H, W = x.shape
    sh, sw = patch_size
    Ho = (H + 2 - 3) // sh + 1
    Wo = (W + 2 - 3) // sw + 1
    xp = jnp.pad(x, ((0, 0), (0, 0), (1, 1), (1, 1)))
    parts = []
    for kh in range(3):
        for kw in range(3):
            parts.append(
                xp[:, :, kh:kh + (Ho - 1) * sh + 1:sh, kw:kw + (Wo - 1) * sw + 1:sw]
            )  # (B, C, Ho, Wo)
    patches = jnp.stack(parts, axis=2)          # (B, C, 9, Ho, Wo)
    patches = patches.transpose(0, 3, 4, 1, 2)  # (B, Ho, Wo, C, 9)
    return patches.reshape(B, Ho * Wo, C * 9), Ho, Wo


def _pick_batch_tile(B, P, K, tile_e, budget_bytes=24 * 1024 * 1024, cap=8):
    """Largest divisor of B (<= cap) whose double-buffered tiles fit the budget."""
    divisors = [d for d in range(1, min(B, cap) + 1) if B % d == 0]
    for bt in reversed(divisors):
        in_bytes = bt * P * max(K, 128) * 2        # bf16 X tile (lane-padded)
        out_bytes = bt * P * max(tile_e, 128) * 4  # f32 out tile (lane-padded)
        if 2 * (in_bytes + out_bytes) <= budget_bytes:  # 2-deep pipelining
            return bt
    return 1


def patch_embed_2d_en(x, conv_w, gamma, beta, patch_size, out_dtype=jnp.float32):
    """x: (B, C, H, W) NCHW. conv_w: (E, C, 3, 3). Returns ((B, P, E), (H//ps, W//ps))."""
    B, C, H, W = x.shape
    E = conv_w.shape[0]

    # bf16 operands for the MXU; f32 accumulation + f32 norm math in the kernel.
    X, Ho, Wo = _im2col(x.astype(jnp.bfloat16), patch_size)      # (B, P, K) bf16
    P, K = X.shape[1], X.shape[2]
    Wmat = conv_w.reshape(E, C * 9).T.astype(jnp.bfloat16)        # (K, E) bf16
    gamma2 = gamma.reshape(1, E).astype(jnp.float32)
    beta2 = beta.reshape(1, E).astype(jnp.float32)

    # Lane-dense (128-wide) E tiles whenever embed_dim allows; single tile otherwise.
    tile_e = 128 if E % 128 == 0 else E
    Bt = _pick_batch_tile(B, P, K, tile_e)
    grid = (B // Bt, E // tile_e)

    out = pl.pallas_call(
        _patch_embed_kernel,
        out_shape=jax.ShapeDtypeStruct((B, P, E), out_dtype),
        grid_spec=pltpu.PrefetchScalarGridSpec(
            num_scalar_prefetch=0,
            grid=grid,
            in_specs=[
                pl.BlockSpec((Bt, P, K), lambda b, e: (b, 0, 0)),
                pl.BlockSpec((K, tile_e), lambda b, e: (0, e)),
                pl.BlockSpec((1, tile_e), lambda b, e: (0, e)),
                pl.BlockSpec((1, tile_e), lambda b, e: (0, e)),
            ],
            out_specs=pl.BlockSpec((Bt, P, tile_e), lambda b, e: (b, 0, e)),
        ),
        compiler_params=pltpu.CompilerParams(
            dimension_semantics=("parallel", "parallel"),
            vmem_limit_bytes=32 * 1024 * 1024,
        ),
    )(X, Wmat, gamma2, beta2)

    # Module semantics: metadata is (H // ps, W // ps). With k=3/stride=ps/pad=1
    # this equals (Ho, Wo) exactly when H, W are multiples of patch_size (the
    # intended use); otherwise the PyTorch module itself is inconsistent.
    return out, (H // patch_size[0], W // patch_size[1])


def _reference(x, conv_w, gamma, beta, patch_size):
    """Pure-JAX reference with the same bf16 operand rounding as the kernel."""
    X, Ho, Wo = _im2col(x.astype(jnp.bfloat16), patch_size)
    E = conv_w.shape[0]
    Wmat = conv_w.reshape(E, -1).T.astype(jnp.bfloat16)
    y = jnp.einsum("bpk,ke->bpe", X.astype(jnp.float32), Wmat.astype(jnp.float32))
    mean = jnp.mean(y, axis=1, keepdims=True)
    var = jnp.mean((y - mean) ** 2, axis=1, keepdims=True)
    y = (y - mean) / jnp.sqrt(var + EPS)
    y = y * gamma.reshape(1, 1, E) + beta.reshape(1, 1, E)
    return jnp.maximum(y, 0.0)


if __name__ == "__main__":
    # Small shapes consistent with the module: img_size=[16,16], patch_size=[4,4],
    # in_chans=4, embed_dim=32, is_proj1=False.
    B, C, H, W = 2, 4, 16, 16
    patch_size = (4, 4)
    E = 32

    key = jax.random.PRNGKey(0)
    kx, kw = jax.random.split(key)
    x = jax.random.normal(kx, (B, C, H, W), dtype=jnp.float32)
    # Conv2d weight (E, C, 3, 3), bias=False; deterministic init.
    conv_w = jax.random.normal(kw, (E, C, 3, 3), dtype=jnp.float32) * 0.1
    # InstanceNorm2d affine defaults: weight=1, bias=0.
    gamma = jnp.ones((E,), dtype=jnp.float32)
    beta = jnp.zeros((E,), dtype=jnp.float32)

    out, hw = patch_embed_2d_en(x, conv_w, gamma, beta, patch_size)
    out = jax.block_until_ready(out)

    ref = _reference(x, conv_w, gamma, beta, patch_size)
    assert out.shape == (B, (H // 4) * (W // 4), E), out.shape
    assert hw == (H // 4, W // 4)
    max_err = float(jnp.max(jnp.abs(out - ref)))
    assert jnp.allclose(out, ref, atol=2e-3, rtol=2e-3), max_err

    print("KERNEL_OK")
</pallas_src>

<mosaic_0001>
module attributes {stable_mosaic.version = 11 : i64} {
  func.func @_patch_embed_kernel(%arg0: i32, %arg1: i32, %arg2: memref<2x16x36xbf16, #tpu.memory_space<vmem>>, %arg3: memref<36x32xbf16, #tpu.memory_space<vmem>>, %arg4: memref<1x32xf32, #tpu.memory_space<vmem>>, %arg5: memref<1x32xf32, #tpu.memory_space<vmem>>, %arg6: memref<2x16x32xf32, #tpu.memory_space<vmem>>) attributes {dimension_semantics = [#tpu.dimension_semantics<parallel>, #tpu.dimension_semantics<parallel>], iteration_bounds = array<i64: 1, 1>, scalar_prefetch = 0 : i64, scratch_operands = 0 : i64, tpu.core_type = #tpu.core_type<tc>, window_params = [{transform_indices = @transform_0, window_bounds = array<i64: 2, 16, 36>}, {transform_indices = @transform_1, window_bounds = array<i64: 36, 32>}, {transform_indices = @transform_2, window_bounds = array<i64: 1, 32>}, {transform_indices = @transform_3, window_bounds = array<i64: 1, 32>}, {transform_indices = @transform_4, window_bounds = array<i64: 2, 16, 32>}]} {
    %c0 = arith.constant 0 : index
    %c0_0 = arith.constant 0 : index
    %0 = vector.load %arg3[%c0, %c0_0] : memref<36x32xbf16, #tpu.memory_space<vmem>>, vector<36x32xbf16>
    %c0_1 = arith.constant 0 : index
    %c0_2 = arith.constant 0 : index
    %1 = vector.load %arg4[%c0_1, %c0_2] : memref<1x32xf32, #tpu.memory_space<vmem>>, vector<1x32xf32>
    %c0_3 = arith.constant 0 : index
    %c0_4 = arith.constant 0 : index
    %2 = vector.load %arg5[%c0_3, %c0_4] : memref<1x32xf32, #tpu.memory_space<vmem>>, vector<1x32xf32>
    %c0_5 = arith.constant 0 : index
    %c0_6 = arith.constant 0 : index
    %c0_7 = arith.constant 0 : index
    %3 = vector.load %arg2[%c0_5, %c0_6, %c0_7] : memref<2x16x36xbf16, #tpu.memory_space<vmem>>, vector<1x16x36xbf16>
    %4 = vector.shape_cast %3 : vector<1x16x36xbf16> to vector<16x36xbf16>
    %cst = arith.constant dense<0.000000e+00> : vector<16x32xf32>
    %5 = tpu.matmul %4, %0, %cst {dimension_numbers = #tpu.dot_dimension_numbers<[1], [0], [0], [1], [0, 0, 1, 1], [], []>} : vector<16x36xbf16>, vector<36x32xbf16>, vector<16x32xf32> -> vector<16x32xf32>
    %cst_8 = arith.constant dense<0.000000e+00> : vector<32xf32>
    %6 = vector.multi_reduction <add>, %5, %cst_8 [0] : vector<16x32xf32> to vector<32xf32>
    %7 = vector.shape_cast %6 : vector<32xf32> to vector<1x32xf32>
    %cst_9 = arith.constant 1.600000e+01 : f32
    %8 = vector.broadcast %cst_9 : f32 to vector<1x32xf32>
    %9 = arith.divf %7, %8 : vector<1x32xf32>
    %10 = vector.broadcast %9 : vector<1x32xf32> to vector<16x32xf32>
    %11 = arith.subf %5, %10 : vector<16x32xf32>
    %12 = arith.mulf %11, %11 : vector<16x32xf32>
    %cst_10 = arith.constant dense<0.000000e+00> : vector<32xf32>
    %13 = vector.multi_reduction <add>, %12, %cst_10 [0] : vector<16x32xf32> to vector<32xf32>
    %14 = vector.shape_cast %13 : vector<32xf32> to vector<1x32xf32>
    %cst_11 = arith.constant 1.600000e+01 : f32
    %15 = vector.broadcast %cst_11 : f32 to vector<1x32xf32>
    %16 = arith.divf %14, %15 : vector<1x32xf32>
    %cst_12 = arith.constant 9.99999974E-6 : f32
    %17 = vector.broadcast %cst_12 : f32 to vector<1x32xf32>
    %18 = arith.addf %16, %17 : vector<1x32xf32>
    %19 = math.rsqrt %18 : vector<1x32xf32>
    %20 = arith.mulf %1, %19 : vector<1x32xf32>
    %21 = arith.mulf %9, %20 : vector<1x32xf32>
    %22 = arith.subf %2, %21 : vector<1x32xf32>
    %23 = vector.broadcast %20 : vector<1x32xf32> to vector<16x32xf32>
    %24 = arith.mulf %5, %23 : vector<16x32xf32>
    %25 = vector.broadcast %22 : vector<1x32xf32> to vector<16x32xf32>
    %26 = arith.addf %24, %25 : vector<16x32xf32>
    %cst_13 = arith.constant 0.000000e+00 : f32
    %27 = vector.broadcast %cst_13 : f32 to vector<16x32xf32>
    %28 = arith.maximumf %26, %27 : vector<16x32xf32>
    %c0_14 = arith.constant 0 : index
    %c0_15 = arith.constant 0 : index
    %c0_16 = arith.constant 0 : index
    %29 = vector.load %arg6[%c0_14, %c0_15, %c0_16] : memref<2x16x32xf32, #tpu.memory_space<vmem>>, vector<1x16x32xf32>
    %30 = vector.shape_cast %29 : vector<1x16x32xf32> to vector<16x32xf32>
    %31 = vector.shape_cast %28 : vector<16x32xf32> to vector<1x16x32xf32>
    tpu.vector_store %arg6[%c0_14, %c0_15, %c0_16], %31 {strides = array<i32>} : memref<2x16x32xf32, #tpu.memory_space<vmem>>, vector<1x16x32xf32>,
    %c1 = arith.constant 1 : index
    %c0_17 = arith.constant 0 : index
    %c0_18 = arith.constant 0 : index
    %32 = vector.load %arg2[%c1, %c0_17, %c0_18] : memref<2x16x36xbf16, #tpu.memory_space<vmem>>, vector<1x16x36xbf16>
    %33 = vector.shape_cast %32 : vector<1x16x36xbf16> to vector<16x36xbf16>
    %cst_19 = arith.constant dense<0.000000e+00> : vector<16x32xf32>
    %34 = tpu.matmul %33, %0, %cst_19 {dimension_numbers = #tpu.dot_dimension_numbers<[1], [0], [0], [1], [0, 0, 1, 1], [], []>} : vector<16x36xbf16>, vector<36x32xbf16>, vector<16x32xf32> -> vector<16x32xf32>
    %cst_20 = arith.constant dense<0.000000e+00> : vector<32xf32>
    %35 = vector.multi_reduction <add>, %34, %cst_20 [0] : vector<16x32xf32> to vector<32xf32>
    %36 = vector.shape_cast %35 : vector<32xf32> to vector<1x32xf32>
    %cst_21 = arith.constant 1.600000e+01 : f32
    %37 = vector.broadcast %cst_21 : f32 to vector<1x32xf32>
    %38 = arith.divf %36, %37 : vector<1x32xf32>
    %39 = vector.broadcast %38 : vector<1x32xf32> to vector<16x32xf32>
    %40 = arith.subf %34, %39 : vector<16x32xf32>
    %41 = arith.mulf %40, %40 : vector<16x32xf32>
    %cst_22 = arith.constant dense<0.000000e+00> : vector<32xf32>
    %42 = vector.multi_reduction <add>, %41, %cst_22 [0] : vector<16x32xf32> to vector<32xf32>
    %43 = vector.shape_cast %42 : vector<32xf32> to vector<1x32xf32>
    %cst_23 = arith.constant 1.600000e+01 : f32
    %44 = vector.broadcast %cst_23 : f32 to vector<1x32xf32>
    %45 = arith.divf %43, %44 : vector<1x32xf32>
    %cst_24 = arith.constant 9.99999974E-6 : f32
    %46 = vector.broadcast %cst_24 : f32 to vector<1x32xf32>
    %47 = arith.addf %45, %46 : vector<1x32xf32>
    %48 = math.rsqrt %47 : vector<1x32xf32>
    %49 = arith.mulf %1, %48 : vector<1x32xf32>
    %50 = arith.mulf %38, %49 : vector<1x32xf32>
    %51 = arith.subf %2, %50 : vector<1x32xf32>
    %52 = vector.broadcast %49 : vector<1x32xf32> to vector<16x32xf32>
    %53 = arith.mulf %34, %52 : vector<16x32xf32>
    %54 = vector.broadcast %51 : vector<1x32xf32> to vector<16x32xf32>
    %55 = arith.addf %53, %54 : vector<16x32xf32>
    %cst_25 = arith.constant 0.000000e+00 : f32
    %56 = vector.broadcast %cst_25 : f32 to vector<16x32xf32>
    %57 = arith.maximumf %55, %56 : vector<16x32xf32>
    %c1_26 = arith.constant 1 : index
    %c0_27 = arith.constant 0 : index
    %c0_28 = arith.constant 0 : index
    %58 = vector.load %arg6[%c1_26, %c0_27, %c0_28] : memref<2x16x32xf32, #tpu.memory_space<vmem>>, vector<1x16x32xf32>
    %59 = vector.shape_cast %58 : vector<1x16x32xf32> to vector<16x32xf32>
    %60 = vector.shape_cast %57 : vector<16x32xf32> to vector<1x16x32xf32>
    tpu.vector_store %arg6[%c1_26, %c0_27, %c0_28], %60 {strides = array<i32>} : memref<2x16x32xf32, #tpu.memory_space<vmem>>, vector<1x16x32xf32>,
    return
  }
  func.func @transform_0(%arg0: i32, %arg1: i32) -> (i32, i32, i32) {
    %c0_i32 = arith.constant 0 : i32
    %c0_i32_0 = arith.constant 0 : i32
    %c0_i32_1 = arith.constant 0 : i32
    return %arg0, %c0_i32, %c0_i32_0 : i32, i32, i32
  }
  func.func @transform_1(%arg0: i32, %arg1: i32) -> (i32, i32) {
    %c0_i32 = arith.constant 0 : i32
    %c0_i32_0 = arith.constant 0 : i32
    return %c0_i32, %arg1 : i32, i32
  }
  func.func @transform_2(%arg0: i32, %arg1: i32) -> (i32, i32) {
    %c0_i32 = arith.constant 0 : i32
    %c0_i32_0 = arith.constant 0 : i32
    return %c0_i32, %arg1 : i32, i32
  }
  func.func @transform_3(%arg0: i32, %arg1: i32) -> (i32, i32) {
    %c0_i32 = arith.constant 0 : i32
    %c0_i32_0 = arith.constant 0 : i32
    return %c0_i32, %arg1 : i32, i32
  }
  func.func @transform_4(%arg0: i32, %arg1: i32) -> (i32, i32, i32) {
    %c0_i32 = arith.constant 0 : i32
    %c0_i32_0 = arith.constant 0 : i32
    return %arg0, %c0_i32, %arg1 : i32, i32, i32
  }
}

</mosaic_0001>

<bundles_post_ra>
// kernel: tpu_custom_call.1
= control target key start
LH: loop header
LB: loop body
LE: loop exit
PB: predicated region body
PF: predicated region fallthrough
CT: control target
= control target key end

     0   :  { %v341_v1 = vmov 0.0   ;;  %vm52_vm0 = vcmask 1041408   ;;  %vm342_vm1 = vmmov 0   ;;  %s436_s0 = inlined_call_operand.vmem [shape: bf16[2,16,36], index: 0, kind: input, shape index: {}]   ;;  %s437_s1 = inlined_call_operand.vmem [shape: bf16[36,32], index: 1, kind: input, shape index: {}]   ;;  %s438_s2 = inlined_call_operand.vmem [shape: f32[1,32], index: 2, kind: input, shape index: {}]   ;;  %s439_s3 = inlined_call_operand.vmem [shape: f32[1,32], index: 3, kind: input, shape index: {}]   ;;  %s440_s4 = inlined_call_operand.hbm [shape: f32[2,16,32], index: 4, kind: output, shape index: {}]  }
   0x1   :  { %v308_v0 = vld [vmem:[%s437_s1] sm:$0xff]   ;;  %283 = vmatprep.subr.bf16.mxu0 %v341_v1  ;;  %293 = vmatprep.subr.bf16.mxu1 %v341_v1  ;;  %v309_v2 = vld [vmem:[%s437_s1 + $0x8] sm:$0xff]   ;;  %v310_v3 = vld [vmem:[%s437_s1 + $0x10] ss:$0 sps:$4 sm:$0x33]  }
   0x2   :  { %284 = vmatpush3.bf16.msra.mxu0 %v308_v0  ;;  %294 = vmatpush3.bf16.msra.mxu1 %v308_v0 }
   0x3   :  { %285 = vmatprep.subr.bf16.mxu0 %v341_v1  ;;  %295 = vmatprep.subr.bf16.mxu1 %v341_v1 }
   0x4   :  { %289 = vmatprep.mubr.msk.bf16.mxu0 %vm342_vm1, %v341_v1  ;;  %299 = vmatprep.mubr.msk.bf16.mxu1 %vm342_vm1, %v341_v1 }
   0x5   :  { %9 = vsyncpa [#allocation3], 0  ;;  %v54_v4 = vsel %vm52_vm0, %v310_v3, 0  ;;  %v311_v5 = vld [vmem:[%s436_s0] sm:$0xff]   ;;  %v312_v6 = vld [vmem:[%s436_s0 + $0x8] sm:$0xff]   ;;  %vm48_vm2 = vcmask 293888  }
   0x6   :  { %286 = vmatpush3.bf16.msra.mxu0 %v309_v2  ;;  %296 = vmatpush3.bf16.msra.mxu1 %v309_v2  ;;  %vm97_vm3 = vcmask 261120   ;;  %v24_v3 = vld [vmem:[%s438_s2] sm:$0x1]  ;;  %s343_s2 = smov [#allocation2]  }
   0x7   :  { %287 = vmatprep.subr.bf16.mxu0 %v341_v1  ;;  %297 = vmatprep.subr.bf16.mxu1 %v341_v1  ;;  %v129_v1 = vlaneseq  ;;  %s255_s27 = sshll.u32 %s343_s2, 4  ;;  %s256_s27 = int_to_ptr.vmem [resolvable:$true] %s255_s27 }
   0x8   :  { %p322_p1 = scmp.lt.s32.totalorder %s256_s27, %s256_s27 }
   0x9   :  { %v130_v2 = vshrl.u32 %v129_v1, 7 }
   0xa   :  { %288 = vmatpush3.bf16.msra.mxu0 %v54_v4  ;;  %298 = vmatpush3.bf16.msra.mxu1 %v54_v4 }
   0xb   :  { %v131_v4 = vsub.s32 0, %v130_v2 }
   0xd   :  { %290 = vmatmul.mubr.msk.bf16.vlgmr.msra.gmra.mrb[0].mxu0 %vm48_vm2, %v311_v5  ;;  %300 = vmatmul.mubr.msk.bf16.vlgmr.msra.gmra.mrb[0].mxu1 %vm48_vm2, %v312_v6 }
  0xe0   :  { %v386_v7 = vpop.f32.mrb[0].mxu0  ;;  %v388_v8 = vpop.f32.mrb[0].mxu1 }
  0xe1   :  { %v291_v9 = vpop.f32.mrb[1].mxu0  ;;  %v301_v10 = vpop.f32.mrb[1].mxu1  ;;  %v98_v13 = vsel %vm97_vm3, %v386_v7, 0.0  ;;  %v200_v14 = vsel %vm97_vm3, %v388_v8, 0.0 }
  0xe2   :  { %v390_v11 = vpop.f32.mrb[2].mxu0  ;;  %v392_v12 = vpop.f32.mrb[2].mxu1  ;;  %v25_v10 = vld [vmem:[%s439_s3] sm:$0x1]  ;;  %s317_s3 = scalar_lea.vmem %s256_s27, 512 }
  0xe3   :  { %v99_v15 = vsel %vm97_vm3, %v390_v11, 0.0  ;;  %v201_v16 = vsel %vm97_vm3, %v392_v12, 0.0  ;;  %v292_v17 = vpop.f32.mrb[3].mxu0  ;;  %v302_v18 = vpop.f32.mrb[3].mxu1  ;;  %p318_p0 = scmp.ne.s32.totalorder %s256_s27, %s317_s3  ;;  %p323_p2 = scmp.lt.s32.totalorder %s317_s3, %s317_s3 }
  0xe4   :  { %v100_v19 = vadd.f32 %v99_v15, %v98_v13  ;;  %v202_v20 = vadd.f32 %v201_v16, %v200_v14 }
  0xe5   :  { %p324_p3 = por %p323_p2, %p322_p1 }
  0xe6   :  { %v101_v21 = vrot.slane %v100_v19, 4  ;;  %v203_v22 = vrot.slane %v202_v20, 4 }
  0xe7   :  { %p325_p4 = pnand %p324_p3, %p318_p0 }
  0xe8   :  { %v102_v23 = vadd.f32 %v101_v21, %v100_v19  ;;  %v204_v24 = vadd.f32 %v203_v22, %v202_v20 }
  0xea   :  { %v103_v25 = vrot.slane %v102_v23, 2  ;;  %v205_v26 = vrot.slane %v204_v24, 2 }
  0xec   :  { %v104_v27 = vadd.f32 %v103_v25, %v102_v23  ;;  %v206_v28 = vadd.f32 %v205_v26, %v204_v24 }
  0xee   :  { %v105_v29 = vrot.slane %v104_v27, 1  ;;  %v207_v30 = vrot.slane %v206_v28, 1 }
  0xf0   :  { %v106_v31 = vadd.f32 %v105_v29, %v104_v27  ;;  %v208_v32 = vadd.f32 %v207_v30, %v206_v28 }
  0xf2   :  { %v108_v33 = vmul.f32 0.0625, %v106_v31  ;;  %v209_v34 = vmul.f32 0.0625, %v208_v32 }
  0xf4   :  { %v109_v35 = vsub.f32 %v386_v7, %v108_v33  ;;  %v110_v36 = vsub.f32 %v390_v11, %v108_v33  ;;  %v210_v37 = vsub.f32 %v388_v8, %v209_v34  ;;  %v211_v38 = vsub.f32 %v392_v12, %v209_v34 }
  0xf6   :  { %v111_v39 = vmul.f32 %v109_v35, %v109_v35  ;;  %v112_v40 = vmul.f32 %v110_v36, %v110_v36  ;;  %v212_v41 = vmul.f32 %v210_v37, %v210_v37  ;;  %v213_v42 = vmul.f32 %v211_v38, %v211_v38 }
  0xf8   :  { %v113_v43 = vsel %vm97_vm3, %v111_v39, 0.0  ;;  %v114_v44 = vsel %vm97_vm3, %v112_v40, 0.0  ;;  %v214_v45 = vsel %vm97_vm3, %v212_v41, 0.0  ;;  %v215_v46 = vsel %vm97_vm3, %v213_v42, 0.0 }
  0xf9   :  { %v115_v47 = vadd.f32 %v114_v44, %v113_v43  ;;  %v216_v48 = vadd.f32 %v215_v46, %v214_v45 }
  0xfb   :  { %v116_v49 = vrot.slane %v115_v47, 4  ;;  %v217_v50 = vrot.slane %v216_v48, 4 }
  0xfd   :  { %v117_v51 = vadd.f32 %v116_v49, %v115_v47  ;;  %v218_v52 = vadd.f32 %v217_v50, %v216_v48 }
  0xff   :  { %v118_v53 = vrot.slane %v117_v51, 2  ;;  %v219_v54 = vrot.slane %v218_v52, 2 }
 0x101   :  { %v119_v55 = vadd.f32 %v118_v53, %v117_v51  ;;  %v220_v56 = vadd.f32 %v219_v54, %v218_v52 }
 0x103   :  { %v120_v57 = vrot.slane %v119_v55, 1  ;;  %v221_v58 = vrot.slane %v220_v56, 1 }
 0x105   :  { %v121_v59 = vadd.f32 %v120_v57, %v119_v55  ;;  %v222_v60 = vadd.f32 %v221_v58, %v220_v56 }
 0x107   :  { %v122_v61 = vmul.f32 0.0625, %v121_v59  ;;  %v223_v62 = vmul.f32 0.0625, %v222_v60 }
 0x109   :  { %v123_v63 = vadd.f32 1e-05, %v122_v61  ;;  %v224_v0 = vadd.f32 1e-05, %v223_v62 }
 0x10b   :  { %313 = vrsqrt.f32 %v123_v63 }
 0x10c   :  { %315 = vrsqrt.f32 %v224_v0 }
 0x115   :  { %v314_v5 = vpop.eup %313 }
 0x116   :  { %v316_v6 = vpop.eup %315  ;;  %v125_v9 = vmul.f32 %v314_v5, %v24_v3 }
 0x117   :  { %v226_v13 = vmul.f32 %v316_v6, %v24_v3 }
 0x118   :  { %v126_v14 = vmul.f32 %v125_v9, %v108_v33  ;;  %v132_v15 = vrot.slane %v125_v9, %v131_v4 }
 0x119   :  { %v227_v16 = vmul.f32 %v226_v13, %v209_v34  ;;  %v233_v17 = vrot.slane %v226_v13, %v131_v4 }
 0x11a   :  { %v127_v18 = vsub.f32 %v25_v10, %v126_v14  ;;  %v134_v19 = vmul.f32 %v132_v15, %v386_v7  ;;  %v135_v20 = vmul.f32 %v132_v15, %v390_v11 }
 0x11b   :  { %v228_v21 = vsub.f32 %v25_v10, %v227_v16  ;;  %v235_v22 = vmul.f32 %v233_v17, %v388_v8  ;;  %v236_v23 = vmul.f32 %v233_v17, %v392_v12 }
 0x11c   :  { %v140_v24 = vrot.slane %v127_v18, %v131_v4 }
 0x11d   :  { %v241_v25 = vrot.slane %v228_v21, %v131_v4 }
 0x11e   :  { %v142_v26 = vadd.f32 %v140_v24, %v134_v19  ;;  %v143_v27 = vadd.f32 %v140_v24, %v135_v20 }
 0x11f   :  { %v243_v28 = vadd.f32 %v241_v25, %v235_v22  ;;  %v244_v29 = vadd.f32 %v241_v25, %v236_v23 }
 0x120   :  { %v144_v30 = vmax.f32 %v142_v26, 0.0  ;;  %v145_v31 = vmax.f32 %v143_v27, 0.0 }
 0x121   :  { %v245_v32 = vmax.f32 %v243_v28, 0.0  ;;  %v246_v7 = vmax.f32 %v244_v29, 0.0 }
 0x122   :  { %146 = vst.msk [vmem:[#allocation2] sm:$0xff] %vm97_vm3, %v144_v30  ;;  %147 = vst.msk [vmem:[#allocation2 + $0x8] sm:$0xff] %vm97_vm3, %v145_v31 }
 0x123   :  { %248 = vst.msk [vmem:[#allocation2 + $0x10] sm:$0xff] %vm97_vm3, %v245_v32  ;;  %249 = vst.msk [vmem:[#allocation2 + $0x18] sm:$0xff] %vm97_vm3, %v246_v7 }
 0x124   :  { %328 = shalt.err (!%p325_p4)
}
 0x125   :  { %s329_s30 = scalar_lea.hbm %s440_s4, 512 }
 0x126   :  { %p330_p5 = scmp.ne.s32.totalorder %s440_s4, %s329_s30  ;;  %p333_p6 = scmp.lt.u32.totalorder %s329_s30, %s440_s4 }
 0x128   :  { %p335_p7 = pnand %p333_p6, %p330_p5 }
 0x12a   :  { %338 = shalt.err (!%p335_p7)
}
 0x12b   :  { %s344_s9 = smov 128   ;;  %s345_s10 = smov 8  }
 0x12c   :  { %261 = dma.vmem_to_hbm [thread:$0]  %s256_s27, 512, %s440_s4, [#allocation3], %s344_s9, %s344_s9, %s345_s10  }
 0x12d   :  { %339 = dma.done.wait [#allocation3], 512  }
 0x12e   :  { %340 = vsyncadd [#allocation3], 4294966784 }
 0x12f   :  { %265 = vsyncpa [#allocation3], 1 }

</bundles_post_ra>
